<compile_context>
chip_gen: v5e
topology: v5e:2x2
jax: 0.10.0
libtpu: 0.0.40
codegen_flags: <defaults>
</compile_context>

<pallas_src>
import functools

import jax
import jax.numpy as jnp
from jax.experimental import pallas as pl
from jax.experimental.pallas import tpu as pltpu

IN_CHANNELS = 312          # fixed by the module: SAGEConv(312, hidden)
HIDDEN_CHANNELS = 32
OUT_CHANNELS = 16

LANE = 128                 # lane-dense half width of the packed projection
PACK = 2 * LANE            # packed projection width: [ W_l | 0 | W_r | 0 ]
VMEM_LIMIT = 32 * 1024 * 1024


# --------------------------------------------------------------------------
# Kernels
# --------------------------------------------------------------------------
def _project_kernel(x_ref, w_ref, o_ref):
    # One fused matmul computes both the neighbor path (x @ W_l, lanes 0:128)
    # and the root path (x @ W_r, lanes 128:256). Output stored bf16.
    o_ref[...] = jnp.dot(x_ref[...], w_ref[...],
                         preferred_element_type=jnp.float32).astype(o_ref.dtype)


def _agg_relu_project_kernel(a_ref, xw_ref, b_ref, w_ref, o_ref, acc_ref, *, tm, tk):
    """Layer-1 aggregation + relu, fused with the layer-2 projection.

    acc[i] = sum_k A[i,k] @ xw1_l[k]          (f32 scratch accumulator)
    h      = relu(acc + xw1_r[i] + b1)
    out[i] = h @ [W2_l | W2_r]                (bf16, consumed by layer-2 agg)
    """
    i = pl.program_id(0)
    k = pl.program_id(1)

    @pl.when(k == 0)
    def _init():
        acc_ref[...] = jnp.zeros_like(acc_ref)

    # neighbor half of the resident projected features, rows = A columns
    row0 = pl.multiple_of(k * tk, tk)
    xw_l = xw_ref[pl.ds(row0, tk), pl.ds(0, LANE)]            # (tk, 128) bf16
    acc_ref[...] += jnp.dot(a_ref[...], xw_l,
                            preferred_element_type=jnp.float32)

    @pl.when(k == pl.num_programs(1) - 1)
    def _finalize():
        r0 = pl.multiple_of(i * tm, tm)
        xw_r = xw_ref[pl.ds(r0, tm), pl.ds(LANE, LANE)]       # (tm, 128) bf16
        h = jnp.maximum(acc_ref[...] + xw_r.astype(jnp.float32) + b_ref[...], 0.0)
        # fused layer-2 projection rides in the MXU slack of a mem-bound kernel
        o_ref[...] = jnp.dot(h.astype(jnp.bfloat16), w_ref[...],
                             preferred_element_type=jnp.float32).astype(o_ref.dtype)


def _agg_bias_kernel(a_ref, xw_ref, b_ref, o_ref, acc_ref, *, tm, tk):
    """Layer-2 aggregation: out[i] = sum_k A[i,k] @ xw2_l[k] + xw2_r[i] + b2."""
    i = pl.program_id(0)
    k = pl.program_id(1)

    @pl.when(k == 0)
    def _init():
        acc_ref[...] = jnp.zeros_like(acc_ref)

    row0 = pl.multiple_of(k * tk, tk)
    xw_l = xw_ref[pl.ds(row0, tk), pl.ds(0, LANE)]            # (tk, 128) bf16
    acc_ref[...] += jnp.dot(a_ref[...], xw_l,
                            preferred_element_type=jnp.float32)

    @pl.when(k == pl.num_programs(1) - 1)
    def _finalize():
        r0 = pl.multiple_of(i * tm, tm)
        xw_r = xw_ref[pl.ds(r0, tm), pl.ds(LANE, LANE)]       # (tm, 128) bf16
        o_ref[...] = acc_ref[...] + xw_r.astype(jnp.float32) + b_ref[...]


# --------------------------------------------------------------------------
# pallas_call wrappers
# --------------------------------------------------------------------------
def _project(x, w_packed, *, tm):
    n_pad, fin = x.shape
    flops = int(2 * n_pad * fin * PACK)
    bytes_accessed = int(4 * n_pad * fin + 4 * fin * PACK + 2 * n_pad * PACK)
    return pl.pallas_call(
        _project_kernel,
        out_shape=jax.ShapeDtypeStruct((n_pad, PACK), jnp.bfloat16),
        grid_spec=pltpu.PrefetchScalarGridSpec(
            num_scalar_prefetch=0,
            grid=(n_pad // tm,),
            in_specs=[
                pl.BlockSpec((tm, fin), lambda i: (i, 0)),     # node-feature rows
                pl.BlockSpec((fin, PACK), lambda i: (0, 0)),   # packed weights (resident)
            ],
            out_specs=pl.BlockSpec((tm, PACK), lambda i: (i, 0)),
        ),
        compiler_params=pltpu.CompilerParams(
            dimension_semantics=("parallel",),
            vmem_limit_bytes=VMEM_LIMIT,
        ),
        cost_estimate=pl.CostEstimate(flops=flops, transcendentals=0,
                                      bytes_accessed=bytes_accessed),
    )(x, w_packed)


def _agg_relu_project(adj, xw, b_pad, w_next, *, tm, tk):
    n_pad = adj.shape[0]
    kern = functools.partial(_agg_relu_project_kernel, tm=tm, tk=tk)
    flops = int(2 * n_pad * n_pad * LANE + 2 * n_pad * LANE * PACK + 4 * n_pad * LANE)
    bytes_accessed = int(2 * n_pad * n_pad + 2 * n_pad * PACK + 2 * n_pad * PACK
                         + 4 * LANE + 2 * LANE * PACK)
    return pl.pallas_call(
        kern,
        out_shape=jax.ShapeDtypeStruct((n_pad, PACK), jnp.bfloat16),
        grid_spec=pltpu.PrefetchScalarGridSpec(
            num_scalar_prefetch=0,
            grid=(n_pad // tm, n_pad // tk),
            in_specs=[
                pl.BlockSpec((tm, tk), lambda i, k: (i, k)),        # A tile (bf16)
                pl.BlockSpec((n_pad, PACK), lambda i, k: (0, 0)),   # resident xw1 (bf16)
                pl.BlockSpec((1, LANE), lambda i, k: (0, 0)),       # bias 1 (resident)
                pl.BlockSpec((LANE, PACK), lambda i, k: (0, 0)),    # packed W2 (resident)
            ],
            out_specs=pl.BlockSpec((tm, PACK), lambda i, k: (i, 0)),
            scratch_shapes=[pltpu.VMEM((tm, LANE), jnp.float32)],   # f32 accumulator
        ),
        compiler_params=pltpu.CompilerParams(
            dimension_semantics=("parallel", "arbitrary"),
            vmem_limit_bytes=VMEM_LIMIT,
        ),
        cost_estimate=pl.CostEstimate(flops=flops, transcendentals=0,
                                      bytes_accessed=bytes_accessed),
    )(adj, xw, b_pad, w_next)


def _agg_bias(adj, xw, b_pad, *, tm, tk):
    n_pad = adj.shape[0]
    kern = functools.partial(_agg_bias_kernel, tm=tm, tk=tk)
    flops = int(2 * n_pad * n_pad * LANE + 3 * n_pad * LANE)
    bytes_accessed = int(2 * n_pad * n_pad + 2 * n_pad * PACK
                         + 4 * n_pad * LANE + 4 * LANE)
    return pl.pallas_call(
        kern,
        out_shape=jax.ShapeDtypeStruct((n_pad, LANE), jnp.float32),
        grid_spec=pltpu.PrefetchScalarGridSpec(
            num_scalar_prefetch=0,
            grid=(n_pad // tm, n_pad // tk),
            in_specs=[
                pl.BlockSpec((tm, tk), lambda i, k: (i, k)),        # A tile (bf16)
                pl.BlockSpec((n_pad, PACK), lambda i, k: (0, 0)),   # resident xw2 (bf16)
                pl.BlockSpec((1, LANE), lambda i, k: (0, 0)),       # bias 2 (resident)
            ],
            out_specs=pl.BlockSpec((tm, LANE), lambda i, k: (i, 0)),
            scratch_shapes=[pltpu.VMEM((tm, LANE), jnp.float32)],   # f32 accumulator
        ),
        compiler_params=pltpu.CompilerParams(
            dimension_semantics=("parallel", "arbitrary"),
            vmem_limit_bytes=VMEM_LIMIT,
        ),
        cost_estimate=pl.CostEstimate(flops=flops, transcendentals=0,
                                      bytes_accessed=bytes_accessed),
    )(adj, xw, b_pad)


def _round_up(x, m):
    return ((x + m - 1) // m) * m


def _pick_tile(n_pad, requested):
    """Largest multiple of 128 that is <= requested and divides n_pad."""
    t = max(128, (min(requested, n_pad) // 128) * 128)
    while n_pad % t:
        t -= 128
    return t


def gnn_block_pallas(x, adj_norm, packed, *, tm=256, tk=512, tm_proj=256):
    """x: [N, 312] f32, adj_norm: [N, N] f32 row-normalized, packed: packed params.

    tm/tk are the node-row / adjacency-column tile sizes for the aggregation
    kernels; they are clamped to divisors of the padded node count so small
    graphs do not over-pad, and tm is capped at n_pad//2 to keep >=2 row tiles
    for v7x megacore sharding.
    """
    n = x.shape[0]
    n_pad = _round_up(n, 128)

    tm = _pick_tile(n_pad, min(tm, max(n_pad // 2, 128)))
    tk = _pick_tile(n_pad, tk)
    tm_proj = _pick_tile(n_pad, tm_proj)

    # Zero-pad nodes so every tile is full; padded rows/cols of A are zero and
    # therefore contribute nothing to real outputs.
    x_p = jnp.pad(x, ((0, n_pad - n), (0, 0)))
    a_p = jnp.pad(adj_norm, ((0, n_pad - n), (0, n_pad - n))).astype(jnp.bfloat16)

    # ---- SAGEConv 1: project-then-aggregate:  A @ (x W1_l), not (A x) W1_l ----
    xw1 = _project(x_p, packed["w1_packed"], tm=tm_proj)                   # [Np, 256] bf16
    # layer-1 aggregation + relu, with layer-2 projection fused in the finalize
    xw2 = _agg_relu_project(a_p, xw1, packed["b1_pad"], packed["w2_packed"],
                            tm=tm, tk=tk)                                  # [Np, 256] bf16

    # ---- SAGEConv 2 aggregation ----
    out = _agg_bias(a_p, xw2, packed["b2_pad"], tm=tm, tk=tk)              # [Np, 128] f32

    return out[:n, :OUT_CHANNELS]


# --------------------------------------------------------------------------
# Glue: adjacency build, parameter init / packing, reference
# --------------------------------------------------------------------------
def build_normalized_adjacency(edge_index, num_nodes):
    """Dense row-normalized adjacency: A[dst, src] = multiplicity / deg_in(dst)."""
    src, dst = edge_index[0], edge_index[1]
    a = jnp.zeros((num_nodes, num_nodes), dtype=jnp.float32)
    a = a.at[dst, src].add(1.0)
    deg = a.sum(axis=1, keepdims=True)
    # scatter-mean semantics: nodes with no incoming edges aggregate to 0
    return jnp.where(deg > 0, a / jnp.maximum(deg, 1.0), 0.0)


def init_params(key):
    """Deterministic synthetic weights, stored as [in, out]."""
    ks = jax.random.split(key, 6)

    def lin(k, fan_in, fan_out):
        bound = 1.0 / jnp.sqrt(fan_in)
        return jax.random.uniform(k, (fan_in, fan_out), jnp.float32, -bound, bound)

    b1_bound = 1.0 / jnp.sqrt(IN_CHANNELS)
    b2_bound = 1.0 / jnp.sqrt(HIDDEN_CHANNELS)
    return {
        "w1_l": lin(ks[0], IN_CHANNELS, HIDDEN_CHANNELS),
        "w1_r": lin(ks[1], IN_CHANNELS, HIDDEN_CHANNELS),
        "b1": jax.random.uniform(ks[2], (1, HIDDEN_CHANNELS), jnp.float32,
                                 -b1_bound, b1_bound),
        "w2_l": lin(ks[3], HIDDEN_CHANNELS, OUT_CHANNELS),
        "w2_r": lin(ks[4], HIDDEN_CHANNELS, OUT_CHANNELS),
        "b2": jax.random.uniform(ks[5], (1, OUT_CHANNELS), jnp.float32,
                                 -b2_bound, b2_bound),
    }


def pack_params(p):
    """Pack (W_l | W_r) into one lane-aligned [Fin, 256] weight per layer."""
    # layer 1: columns [0:32] = W1_l, columns [128:160] = W1_r  (f32)
    w1 = jnp.zeros((IN_CHANNELS, PACK), jnp.float32)
    w1 = w1.at[:, :HIDDEN_CHANNELS].set(p["w1_l"])
    w1 = w1.at[:, LANE:LANE + HIDDEN_CHANNELS].set(p["w1_r"])
    b1 = jnp.zeros((1, LANE), jnp.float32).at[:, :HIDDEN_CHANNELS].set(p["b1"])

    # layer 2: input is the 128-wide (zero-padded) h; rows >= 32 are unused.
    # Stored bf16 because it is consumed by the fused bf16 projection in-kernel.
    w2 = jnp.zeros((LANE, PACK), jnp.float32)
    w2 = w2.at[:HIDDEN_CHANNELS, :OUT_CHANNELS].set(p["w2_l"])
    w2 = w2.at[:HIDDEN_CHANNELS, LANE:LANE + OUT_CHANNELS].set(p["w2_r"])
    b2 = jnp.zeros((1, LANE), jnp.float32).at[:, :OUT_CHANNELS].set(p["b2"])

    return {"w1_packed": w1, "b1_pad": b1,
            "w2_packed": w2.astype(jnp.bfloat16), "b2_pad": b2}


def reference_jax(x, adj_norm, p):
    h = jnp.maximum(adj_norm @ x @ p["w1_l"] + x @ p["w1_r"] + p["b1"], 0.0)
    return adj_norm @ h @ p["w2_l"] + h @ p["w2_r"] + p["b2"]


# --------------------------------------------------------------------------
if __name__ == "__main__":
    key = jax.random.PRNGKey(0)
    k_x, k_e, k_p = jax.random.split(key, 3)

    num_nodes = 64
    num_edges = 256

    x = jax.random.normal(k_x, (num_nodes, IN_CHANNELS), dtype=jnp.float32)
    edge_index = jax.random.randint(k_e, (2, num_edges), 0, num_nodes,
                                    dtype=jnp.int32)

    adj_norm = build_normalized_adjacency(edge_index, num_nodes)
    params = init_params(k_p)
    packed = pack_params(params)

    out = jax.block_until_ready(gnn_block_pallas(x, adj_norm, packed))
    ref = jax.block_until_ready(reference_jax(x, adj_norm, params))

    assert out.shape == (num_nodes, OUT_CHANNELS)
    # bf16 adjacency / projected features (f32 accumulation) + reassociated
    # matmul order -> loosened tolerance vs the f32 reference.
    max_err = float(jnp.max(jnp.abs(out - ref)))
    assert jnp.allclose(out, ref, atol=3e-2, rtol=3e-2), max_err

    print("KERNEL_OK")
</pallas_src>

<mosaic_0001>
module attributes {stable_mosaic.version = 11 : i64} {
  func.func @_project_kernel(%arg0: i32, %arg1: memref<128x312xf32, #tpu.memory_space<vmem>>, %arg2: memref<312x256xf32, #tpu.memory_space<vmem>>, %arg3: memref<128x256xbf16, #tpu.memory_space<vmem>>) attributes {dimension_semantics = [#tpu.dimension_semantics<parallel>], iteration_bounds = array<i64: 1>, scalar_prefetch = 0 : i64, scratch_operands = 0 : i64, tpu.core_type = #tpu.core_type<tc>, window_params = [{transform_indices = @transform_0, window_bounds = array<i64: 128, 312>}, {pipeline_mode = #tpu.pipeline_mode<synchronous>, transform_indices = @transform_1, window_bounds = array<i64: 312, 256>}, {transform_indices = @transform_2, window_bounds = array<i64: 128, 256>}]} {
    %c0 = arith.constant 0 : index
    %c0_0 = arith.constant 0 : index
    %0 = vector.load %arg1[%c0, %c0_0] : memref<128x312xf32, #tpu.memory_space<vmem>>, vector<128x312xf32>
    %c0_1 = arith.constant 0 : index
    %c0_2 = arith.constant 0 : index
    %1 = vector.load %arg2[%c0_1, %c0_2] : memref<312x256xf32, #tpu.memory_space<vmem>>, vector<312x256xf32>
    %cst = arith.constant dense<0.000000e+00> : vector<128x256xf32>
    %2 = tpu.matmul %0, %1, %cst {dimension_numbers = #tpu.dot_dimension_numbers<[1], [0], [0], [1], [0, 0, 1, 1], [], []>} : vector<128x312xf32>, vector<312x256xf32>, vector<128x256xf32> -> vector<128x256xf32>
    %3 = arith.truncf %2 : vector<128x256xf32> to vector<128x256xbf16>
    %c0_3 = arith.constant 0 : index
    %c0_4 = arith.constant 0 : index
    %4 = vector.load %arg3[%c0_3, %c0_4] : memref<128x256xbf16, #tpu.memory_space<vmem>>, vector<128x256xbf16>
    tpu.vector_store %arg3[%c0_3, %c0_4], %3 {strides = array<i32>} : memref<128x256xbf16, #tpu.memory_space<vmem>>, vector<128x256xbf16>,
    return
  }
  func.func @transform_0(%arg0: i32) -> (i32, i32) {
    %c0_i32 = arith.constant 0 : i32
    %c0_i32_0 = arith.constant 0 : i32
    return %arg0, %c0_i32 : i32, i32
  }
  func.func @transform_1(%arg0: i32) -> (i32, i32) {
    %c0_i32 = arith.constant 0 : i32
    %c0_i32_0 = arith.constant 0 : i32
    %c0_i32_1 = arith.constant 0 : i32
    return %c0_i32, %c0_i32_0 : i32, i32
  }
  func.func @transform_2(%arg0: i32) -> (i32, i32) {
    %c0_i32 = arith.constant 0 : i32
    %c0_i32_0 = arith.constant 0 : i32
    return %arg0, %c0_i32 : i32, i32
  }
}

</mosaic_0001>

<bundles_post_ra>
// kernel: tpu_custom_call.1
= control target key start
LH: loop header
LB: loop body
LE: loop exit
PB: predicated region body
PF: predicated region fallthrough
CT: control target
= control target key end

     0   :  { %vm138_vm0 = vcmask 457728   ;;  %s1365_s0 = inlined_call_operand.vmem [shape: f32[128,312], index: 0, kind: input, shape index: {}]   ;;  %s1366_s1 = inlined_call_operand.vmem [shape: f32[312,256], index: 1, kind: input, shape index: {}]   ;;  %s1367_s2 = inlined_call_operand.hbm [shape: bf16[128,256], index: 2, kind: output, shape index: {}]  }
   0x1   :  { %v90_v0 = vld [vmem:[%s1366_s1 + $0xf0] sm:$0xff]  ;;  %v136_v1 = vld [vmem:[%s1366_s1 + $0x260] sm:$0xff]  ;;  %v123_v15 = vld [vmem:[%s1366_s1 + $0x1f8] sm:$0xff] }
   0x2   :  { %v88_v2 = vld [vmem:[%s1366_s1 + $0xe0] sm:$0xff]  ;;  %659 = vmatpush.msra.mxu1 %v90_v0  ;;  %326 = vmatpush.msra.mxu2 %v136_v1  ;;  %v134_v3 = vld [vmem:[%s1366_s1 + $0x250] sm:$0xff]  ;;  %v121_v18 = vld [vmem:[%s1366_s1 + $0x1e8] sm:$0xff] }
   0x3   :  { %v86_v4 = vld [vmem:[%s1366_s1 + $0xd0] sm:$0xff]  ;;  %v132_v5 = vld [vmem:[%s1366_s1 + $0x240] sm:$0xff]  ;;  %187 = vmatpush.msra.mxu0 %v90_v0  ;;  %675 = vmatpush.msra.mxu3 %v136_v1  ;;  %v119_v21 = vld [vmem:[%s1366_s1 + $0x1d8] sm:$0xff] }
   0x4   :  { %660 = vmatpush.msra.mxu1 %v88_v2  ;;  %327 = vmatpush.msra.mxu2 %v134_v3  ;;  %v84_v6 = vld [vmem:[%s1366_s1 + $0xc0] sm:$0xff]  ;;  %v130_v7 = vld [vmem:[%s1366_s1 + $0x230] sm:$0xff]  ;;  %v91_v22 = vld [vmem:[%s1366_s1 + $0xf8] sm:$0xff] }
   0x5   :  { %188 = vmatpush.msra.mxu0 %v88_v2  ;;  %676 = vmatpush.msra.mxu3 %v134_v3  ;;  %v82_v8 = vld [vmem:[%s1366_s1 + $0xb0] sm:$0xff]  ;;  %v128_v9 = vld [vmem:[%s1366_s1 + $0x220] sm:$0xff]  ;;  %v117_v24 = vld [vmem:[%s1366_s1 + $0x1c8] sm:$0xff] }
   0x6   :  { %661 = vmatpush.msra.mxu1 %v86_v4  ;;  %328 = vmatpush.msra.mxu2 %v132_v5  ;;  %v80_v10 = vld [vmem:[%s1366_s1 + $0xa0] sm:$0xff]  ;;  %v126_v11 = vld [vmem:[%s1366_s1 + $0x210] sm:$0xff] }
   0x7   :  { %189 = vmatpush.msra.mxu0 %v86_v4  ;;  %677 = vmatpush.msra.mxu3 %v132_v5  ;;  %v78_v12 = vld [vmem:[%s1366_s1 + $0x90] sm:$0xff]  ;;  %v124_v13 = vld [vmem:[%s1366_s1 + $0x200] sm:$0xff] }
   0x8   :  { %662 = vmatpush.msra.mxu1 %v84_v6  ;;  %329 = vmatpush.msra.mxu2 %v130_v7  ;;  %v781_v14 = vld [vmem:[%s1365_s0 + $0x10] sm:$0xff]  ;;  %v76_v16 = vld [vmem:[%s1366_s1 + $0x80] sm:$0xff] }
   0x9   :  { %190 = vmatpush.msra.mxu0 %v84_v6  ;;  %678 = vmatpush.msra.mxu3 %v130_v7  ;;  %v74_v17 = vld [vmem:[%s1366_s1 + $0x70] sm:$0xff]  ;;  %v800_v19 = vld [vmem:[%s1365_s0 + $0x100] sm:$0xff] }
   0xa   :  { %663 = vmatpush.msra.mxu1 %v82_v8  ;;  %330 = vmatpush.msra.mxu2 %v128_v9  ;;  %v72_v20 = vld [vmem:[%s1366_s1 + $0x60] sm:$0xff]  ;;  %v70_v23 = vld [vmem:[%s1366_s1 + $0x50] sm:$0xff] }
   0xb   :  { %191 = vmatpush.msra.mxu0 %v82_v8  ;;  %679 = vmatpush.msra.mxu3 %v128_v9 }
   0xc   :  { %664 = vmatpush.msra.mxu1 %v80_v10  ;;  %331 = vmatpush.msra.mxu2 %v126_v11 }
   0xd   :  { %192 = vmatpush.msra.mxu0 %v80_v10  ;;  %680 = vmatpush.msra.mxu3 %v126_v11 }
   0xe   :  { %665 = vmatpush.msra.mxu1 %v78_v12  ;;  %332 = vmatpush.msra.mxu2 %v124_v13 }
   0xf   :  { %627 = vmatmul.msk.f32.vlgmr.msra.gmra.mxu2 %vm138_vm0, %v781_v14  ;;  %193 = vmatpush.msra.mxu0 %v78_v12 }
  0x10   :  { %447 = vmatpush.msrb.mxu2 %v123_v15  ;;  %666 = vmatpush.msra.mxu1 %v76_v16 }
  0x11   :  { %194 = vmatpush.msra.mxu0 %v76_v16  ;;  %681 = vmatpush.msra.mxu3 %v124_v13 }
  0x12   :  { %667 = vmatpush.msra.mxu1 %v74_v17  ;;  %448 = vmatpush.msrb.mxu2 %v121_v18 }
  0x13   :  { %195 = vmatpush.msra.mxu0 %v74_v17  ;;  %637 = vmatmul.msk.f32.vlgmr.msra.gmra.mxu3 %vm138_vm0, %v800_v19 }
  0x14   :  { %7 = vsyncpa [#allocation3], 0  ;;  %668 = vmatpush.msra.mxu1 %v72_v20  ;;  %v822_v25 = vld [vmem:[%s1365_s0 + $0x28] sm:$0xff]  ;;  %449 = vmatpush.msrb.mxu2 %v119_v21  ;;  %v68_v26 = vld [vmem:[%s1366_s1 + $0x40] sm:$0xff]  ;;  %s615_s10 = sshll.u32 %s1367_s2, 4  ;;  %s719_s11 = smov 128   ;;  %s616_s10 = int_to_ptr.hbm [resolvable:$true] %s615_s10 }
  0x15   :  { %196 = vmatpush.msra.mxu0 %v72_v20  ;;  %v115_v27 = vld [vmem:[%s1366_s1 + $0x1b8] sm:$0xff]  ;;  %382 = vmatpush.msrb.mxu3 %v91_v22  ;;  %v89_v28 = vld [vmem:[%s1366_s1 + $0xe8] sm:$0xff]  ;;  %v66_v29 = vld [vmem:[%s1366_s1 + $0x30] sm:$0xff]  ;;  %s720_s12 = smov 8  }
  0x16   :  { %669 = vmatpush.msra.mxu1 %v70_v23  ;;  %450 = vmatpush.msrb.mxu2 %v117_v24  ;;  %v113_v30 = vld [vmem:[%s1366_s1 + $0x1a8] sm:$0xff]  ;;  %v87_v31 = vld [vmem:[%s1366_s1 + $0xd8] sm:$0xff]  ;;  %v64_v32 = vld [vmem:[%s1366_s1 + $0x20] sm:$0xff] }
  0x17   :  { %628 = vmatmul.msk.f32.gmra.mxu2 %vm138_vm0, %v822_v25  ;;  %197 = vmatpush.msra.mxu0 %v70_v23  ;;  %v111_v33 = vld [vmem:[%s1366_s1 + $0x198] sm:$0xff]  ;;  %v62_v35 = vld [vmem:[%s1366_s1 + $0x10] sm:$0xff]  ;;  %v85_v36 = vld [vmem:[%s1366_s1 + $0xc8] sm:$0xff] }
  0x18   :  { %670 = vmatpush.msra.mxu1 %v68_v26  ;;  %451 = vmatpush.msrb.mxu2 %v115_v27  ;;  %v853_v34 = vld [vmem:[%s1365_s0 + $0x118] sm:$0xff]  ;;  %v864_v37 = vld [vmem:[%s1365_s0 + $0x40] sm:$0xff]  ;;  %v109_v39 = vld [vmem:[%s1366_s1 + $0x188] sm:$0xff] }
  0x19   :  { %198 = vmatpush.msra.mxu0 %v68_v26  ;;  %383 = vmatpush.msrb.mxu3 %v89_v28  ;;  %v60_v38 = vld [vmem:[%s1366_s1] sm:$0xff]  ;;  %v122_v41 = vld [vmem:[%s1366_s1 + $0x1f0] sm:$0xff]  ;;  %v892_v43 = vld [vmem:[%s1366_s1 + $0x268] sm:$0xff] }
  0x1a   :  { %671 = vmatpush.msra.mxu1 %v66_v29  ;;  %452 = vmatpush.msrb.mxu2 %v113_v30  ;;  %v877_v40 = vld [vmem:[%s1365_s0 + $0xc0] sm:$0xff]  ;;  %v83_v44 = vld [vmem:[%s1366_s1 + $0xb8] sm:$0xff]  ;;  %v81_v47 = vld [vmem:[%s1366_s1 + $0xa8] sm:$0xff] }
  0x1b   :  { %199 = vmatpush.msra.mxu0 %v66_v29  ;;  %384 = vmatpush.msrb.mxu3 %v87_v31  ;;  %v887_v42 = vld [vmem:[%s1365_s0] sm:$0xff]  ;;  %v107_v46 = vld [vmem:[%s1366_s1 + $0x178] sm:$0xff]  ;;  %v118_v49 = vld [vmem:[%s1366_s1 + $0x1d0] sm:$0xff] }
  0x1c   :  { %672 = vmatpush.msra.mxu1 %v64_v32  ;;  %453 = vmatpush.msrb.mxu2 %v111_v33  ;;  %v120_v45 = vld [vmem:[%s1366_s1 + $0x1e0] sm:$0xff]  ;;  %v911_v48 = vld [vmem:[%s1366_s1 + $0x258] sm:$0xff]  ;;  %v920_v50 = vld [vmem:[%s1365_s0 + $0x130] sm:$0xff] }
  0x1d   :  { %200 = vmatpush.msra.mxu0 %v64_v32  ;;  %638 = vmatmul.msk.f32.gmra.mxu3 %vm138_vm0, %v853_v34  ;;  %v925_v51 = vld [vmem:[%s1365_s0 + $0x58] sm:$0xff]  ;;  %v116_v53 = vld [vmem:[%s1366_s1 + $0x1c0] sm:$0xff]  ;;  %v105_v54 = vld [vmem:[%s1366_s1 + $0x168] sm:$0xff] }
  0x1e   :  { %673 = vmatpush.msra.mxu1 %v62_v35  ;;  %385 = vmatpush.msrb.mxu3 %v85_v36  ;;  %v79_v52 = vld [vmem:[%s1366_s1 + $0x98] sm:$0xff]  ;;  %v77_v56 = vld [vmem:[%s1366_s1 + $0x88] sm:$0xff]  ;;  %v114_v58 = vld [vmem:[%s1366_s1 + $0x1b0] sm:$0xff] }
  0x1f   :  { %629 = vmatmul.msk.f32.gmra.mxu2 %vm138_vm0, %v864_v37  ;;  %201 = vmatpush.msra.mxu0 %v62_v35  ;;  %v940_v55 = vld [vmem:[%s1365_s0 + $0xd8] sm:$0xff]  ;;  %v112_v61 = vld [vmem:[%s1366_s1 + $0x1a0] sm:$0xff]  ;;  %v970_v62 = vld [vmem:[%s1366_s1 + $0x248] sm:$0xff] }
  0x20   :  { %674 = vmatpush.msra.mxu1 %v60_v38  ;;  %454 = vmatpush.msrb.mxu2 %v109_v39  ;;  %v952_v57 = vld [vmem:[%s1365_s0 + $0x18] sm:$0xff]  ;;  %v73_v63 = vld [vmem:[%s1366_s1 + $0x68] sm:$0xff]  ;;  %v110_v1 = vld [vmem:[%s1366_s1 + $0x190] sm:$0xff] }
  0x21   :  { %227 = vmatmul.f32.vlgmr.msra.gmra.mxu1 %v877_v40  ;;  %202 = vmatpush.msra.mxu0 %v60_v38  ;;  %v75_v59 = vld [vmem:[%s1366_s1 + $0x78] sm:$0xff]  ;;  %v101_v0 = vld [vmem:[%s1366_s1 + $0x148] sm:$0xff]  ;;  %v990_v3 = vld [vmem:[%s1365_s0 + $0x70] sm:$0xff] }
  0x22   :  { %252 = vmatpush.msrb.mxu1 %v122_v41  ;;  %203 = vmatmul.f32.vlgmr.msra.gmra.mxu0 %v887_v42  ;;  %v103_v60 = vld [vmem:[%s1366_s1 + $0x158] sm:$0xff]  ;;  %v985_v2 = vld [vmem:[%s1365_s0 + $0x148] sm:$0xff]  ;;  %v108_v5 = vld [vmem:[%s1366_s1 + $0x180] sm:$0xff] }
  0x23   :  { %521 = vmatpush.msrb.mxu0 %v892_v43  ;;  %386 = vmatpush.msrb.mxu3 %v83_v44  ;;  %v71_v4 = vld [vmem:[%s1366_s1 + $0x58] sm:$0xff]  ;;  %v1005_v7 = vld [vmem:[%s1365_s0 + $0xf0] sm:$0xff]  ;;  %v69_v8 = vld [vmem:[%s1366_s1 + $0x48] sm:$0xff] }
  0x24   :  { %253 = vmatpush.msrb.mxu1 %v120_v45  ;;  %455 = vmatpush.msrb.mxu2 %v107_v46  ;;  %v99_v6 = vld [vmem:[%s1366_s1 + $0x138] sm:$0xff]  ;;  %v1017_v9 = vld [vmem:[%s1365_s0 + $0x30] sm:$0xff]  ;;  %v104_v13 = vld [vmem:[%s1366_s1 + $0x160] sm:$0xff] }
  0x25   :  { %387 = vmatpush.msrb.mxu3 %v81_v47  ;;  %522 = vmatpush.msrb.mxu0 %v911_v48  ;;  %v106_v10 = vld [vmem:[%s1366_s1 + $0x170] sm:$0xff]  ;;  %v131_v11 = vld [vmem:[%s1366_s1 + $0x238] sm:$0xff]  ;;  %v97_v15 = vld [vmem:[%s1366_s1 + $0x128] sm:$0xff] }
  0x26   :  { %254 = vmatpush.msrb.mxu1 %v118_v49  ;;  %639 = vmatmul.msk.f32.gmra.mxu3 %vm138_vm0, %v920_v50  ;;  %v67_v12 = vld [vmem:[%s1366_s1 + $0x38] sm:$0xff]  ;;  %v65_v16 = vld [vmem:[%s1366_s1 + $0x28] sm:$0xff]  ;;  %v1045_v18 = vld [vmem:[%s1365_s0 + $0x160] sm:$0xff] }
  0x27   :  { %630 = vmatmul.msk.f32.gmra.mxu2 %vm138_vm0, %v925_v51  ;;  %388 = vmatpush.msrb.mxu3 %v79_v52  ;;  %v129_v17 = vld [vmem:[%s1366_s1 + $0x228] sm:$0xff]  ;;  %v102_v20 = vld [vmem:[%s1366_s1 + $0x150] sm:$0xff]  ;;  %v63_v22 = vld [vmem:[%s1366_s1 + $0x18] sm:$0xff] }
  0x28   :  { %255 = vmatpush.msrb.mxu1 %v116_v53  ;;  %456 = vmatpush.msrb.mxu2 %v105_v54  ;;  %v1053_v21 = vld [vmem:[%s1365_s0 + $0x88] sm:$0xff]  ;;  %v100_v23 = vld [vmem:[%s1366_s1 + $0x140] sm:$0xff]  ;;  %v95_v24 = vld [vmem:[%s1366_s1 + $0x118] sm:$0xff] }
  0x29   :  { %230 = vmatmul.f32.gmra.mxu1 %v940_v55  ;;  %389 = vmatpush.msrb.mxu3 %v77_v56  ;;  %v1067_v26 = vld [vmem:[%s1365_s0 + $0x108] sm:$0xff]  ;;  %v98_v29 = vld [vmem:[%s1366_s1 + $0x130] sm:$0xff]  ;;  %v96_v30 = vld [vmem:[%s1366_s1 + $0x120] sm:$0xff] }
  0x2a   :  { %206 = vmatmul.f32.gmra.mxu0 %v952_v57  ;;  %256 = vmatpush.msrb.mxu1 %v114_v58  ;;  %v61_v27 = vld [vmem:[%s1366_s1 + $0x8] sm:$0xff]  ;;  %v127_v32 = vld [vmem:[%s1366_s1 + $0x218] sm:$0xff]  ;;  %v94_v35 = vld [vmem:[%s1366_s1 + $0x110] sm:$0xff] }
  0x2b   :  { %390 = vmatpush.msrb.mxu3 %v75_v59  ;;  %457 = vmatpush.msrb.mxu2 %v103_v60  ;;  %v21_v28 = vld [vmem:[%s1365_s0 + $0x48] sm:$0xff]  ;;  %v1095_v33 = vld [vmem:[%s1365_s0 + $0x178] sm:$0xff]  ;;  %v1104_v36 = vld [vmem:[%s1365_s0 + $0xa0] sm:$0xff] }
  0x2c   :  { %257 = vmatpush.msrb.mxu1 %v112_v61  ;;  %523 = vmatpush.msrb.mxu0 %v970_v62  ;;  %v93_v31 = vld [vmem:[%s1366_s1 + $0x108] sm:$0xff]  ;;  %v1110_v38 = vld [vmem:[%s1365_s0 + $0x120] sm:$0xff]  ;;  %v1130_v44 = vld [vmem:[%s1365_s0 + $0xb8] sm:$0xff] }
  0x2d   :  { %391 = vmatpush.msrb.mxu3 %v73_v63  ;;  %458 = vmatpush.msrb.mxu2 %v101_v0  ;;  %v24_v39 = vld [vmem:[%s1365_s0 + $0x60] sm:$0xff]  ;;  %v1135_v45 = vld [vmem:[%s1365_s0 + $0x138] sm:$0xff]  ;;  %v1147_v47 = vld [vmem:[%s1365_s0 + $0xd0] sm:$0xff] }
  0x2e   :  { %258 = vmatpush.msrb.mxu1 %v110_v1  ;;  %640 = vmatmul.msk.f32.gmra.mxu3 %vm138_vm0, %v985_v2  ;;  %v92_v41 = vld [vmem:[%s1366_s1 + $0x100] sm:$0xff]  ;;  %v27_v46 = vld [vmem:[%s1365_s0 + $0x78] sm:$0xff]  ;;  %v1164_v49 = vld [vmem:[%s1365_s0 + $0xe8] sm:$0xff] }
  0x2f   :  { %631 = vmatmul.msk.f32.gmra.mxu2 %vm138_vm0, %v990_v3  ;;  %392 = vmatpush.msrb.mxu3 %v71_v4  ;;  %v1169_v52 = vld [vmem:[%s1365_s0 + $0x168] sm:$0xff]  ;;  %v16_v56 = vld [vmem:[%s1365_s0 + $0x20] sm:$0xff] }
  0x30   :  { %259 = vmatpush.msrb.mxu1 %v108_v5  ;;  %459 = vmatpush.msrb.mxu2 %v99_v6  ;;  %v33_v53 = vld [vmem:[%s1365_s0 + $0xa8] sm:$0xff]  ;;  %v40_v1 = vld [vmem:[%s1365_s0 + $0xe0] sm:$0xff] }
  0x31   :  { %233 = vmatmul.f32.gmra.mxu1 %v1005_v7  ;;  %393 = vmatpush.msrb.mxu3 %v69_v8  ;;  %v13_v54 = vld [vmem:[%s1365_s0 + $0x8] sm:$0xff] }
  0x32   :  { %209 = vmatmul.f32.gmra.mxu0 %v1017_v9  ;;  %260 = vmatpush.msrb.mxu1 %v106_v10 }
  0x33   :  { %524 = vmatpush.msrb.mxu0 %v131_v11  ;;  %394 = vmatpush.msrb.mxu3 %v67_v12  ;;  %v46_v12 = vld [vmem:[%s1365_s0 + $0x110] sm:$0xff] }
  0x34   :  { %261 = vmatpush.msrb.mxu1 %v104_v13  ;;  %460 = vmatpush.msrb.mxu2 %v97_v15 }
  0x35   :  { %395 = vmatpush.msrb.mxu3 %v65_v16  ;;  %525 = vmatpush.msrb.mxu0 %v129_v17 }
  0x36   :  { %641 = vmatmul.msk.f32.gmra.mxu3 %vm138_vm0, %v1045_v18  ;;  %262 = vmatpush.msrb.mxu1 %v102_v20 }
  0x37   :  { %632 = vmatmul.msk.f32.gmra.mxu2 %vm138_vm0, %v1053_v21  ;;  %396 = vmatpush.msrb.mxu3 %v63_v22 }
  0x38   :  { %263 = vmatpush.msrb.mxu1 %v100_v23  ;;  %461 = vmatpush.msrb.mxu2 %v95_v24 }
  0x39   :  { %236 = vmatmul.f32.gmra.mxu1 %v1067_v26  ;;  %397 = vmatpush.msrb.mxu3 %v61_v27 }
  0x3a   :  { %212 = vmatmul.f32.gmra.mxu0 %v21_v28  ;;  %264 = vmatpush.msrb.mxu1 %v98_v29 }
  0x3b   :  { %682 = vmatpush.msra.mxu3 %v892_v43  ;;  %462 = vmatpush.msrb.mxu2 %v93_v31  ;;  %v125_v43 = vld [vmem:[%s1366_s1 + $0x208] sm:$0xff] }
  0x3c   :  { %265 = vmatpush.msrb.mxu1 %v96_v30  ;;  %526 = vmatpush.msrb.mxu0 %v127_v32 }
  0x3d   :  { %683 = vmatpush.msra.mxu3 %v911_v48  ;;  %v30_v48 = vld [vmem:[%s1365_s0 + $0x90] sm:$0xff] }
  0x3e   :  { %642 = vmatmul.msk.f32.gmra.mxu3 %vm138_vm0, %v1095_v33  ;;  %266 = vmatpush.msrb.mxu1 %v94_v35 }
  0x3f   :  { %633 = vmatmul.msk.f32.gmra.mxu2 %vm138_vm0, %v1104_v36  ;;  %684 = vmatpush.msra.mxu3 %v970_v62 }
  0x40   :  { %267 = vmatpush.msrb.mxu1 %v92_v41  ;;  %527 = vmatpush.msrb.mxu0 %v125_v43 }
  0x41   :  { %239 = vmatmul.f32.gmra.mxu1 %v1110_v38  ;;  %685 = vmatpush.msra.mxu3 %v131_v11 }
  0x42   :  { %215 = vmatmul.f32.gmra.mxu0 %v24_v39 }
  0x43   :  { %686 = vmatpush.msra.mxu3 %v129_v17 }
  0x45   :  { %687 = vmatpush.msra.mxu3 %v127_v32 }
  0x46   :  { %398 = vmatmul.f32.vlgmr.msrb.gmra.mxu3 %v887_v42  ;;  %v1152_v42 = vld [vmem:[%s1365_s0 + $0x150] sm:$0xff] }
  0x47   :  { %634 = vmatmul.msk.f32.gmra.mxu2 %vm138_vm0, %v1130_v44  ;;  %688 = vmatpush.msra.mxu3 %v125_v43 }
  0x49   :  { %242 = vmatmul.f32.gmra.mxu1 %v1135_v45 }
  0x4a   :  { %218 = vmatmul.f32.gmra.mxu0 %v27_v46 }
  0x4e   :  { %401 = vmatmul.f32.gmra.mxu3 %v952_v57  ;;  %v19_v57 = vld [vmem:[%s1365_s0 + $0x38] sm:$0xff] }
  0x4f   :  { %635 = vmatmul.msk.f32.gmra.mxu2 %vm138_vm0, %v1147_v47 }
  0x51   :  { %245 = vmatmul.f32.gmra.mxu1 %v1152_v42 }
  0x52   :  { %221 = vmatmul.f32.gmra.mxu0 %v30_v48 }
  0x56   :  { %404 = vmatmul.f32.gmra.mxu3 %v1017_v9 }
  0x57   :  { %636 = vmatmul.msk.f32.gmra.mxu2 %vm138_vm0, %v1164_v49 }
  0x59   :  { %248 = vmatmul.f32.gmra.mxu1 %v1169_v52 }
  0x5a   :  { %224 = vmatmul.f32.gmra.mxu0 %v33_v53 }
  0x5e   :  { %407 = vmatmul.f32.gmra.mxu3 %v21_v28 }
  0x5f   :  { %463 = vmatmul.f32.vlgmr.msrb.gmra.mxu2 %v13_v54 }
  0x61   :  { %268 = vmatmul.f32.vlgmr.msrb.gmra.mxu1 %v13_v54 }
  0x62   :  { %643 = vmatmul.msk.f32.vlgmr.msrb.gmra.mxu0 %vm138_vm0, %v781_v14  ;;  %v22_v14 = vld [vmem:[%s1365_s0 + $0x50] sm:$0xff] }
  0x66   :  { %410 = vmatmul.f32.gmra.mxu3 %v24_v39 }
  0x67   :  { %466 = vmatmul.f32.gmra.mxu2 %v16_v56 }
  0x69   :  { %271 = vmatmul.f32.gmra.mxu1 %v16_v56 }
  0x6a   :  { %644 = vmatmul.msk.f32.gmra.mxu0 %vm138_vm0, %v822_v25  ;;  %v25_v25 = vld [vmem:[%s1365_s0 + $0x68] sm:$0xff] }
  0x6e   :  { %413 = vmatmul.f32.gmra.mxu3 %v27_v46 }
  0x6f   :  { %469 = vmatmul.f32.gmra.mxu2 %v19_v57 }
  0x71   :  { %274 = vmatmul.f32.gmra.mxu1 %v19_v57 }
  0x72   :  { %645 = vmatmul.msk.f32.gmra.mxu0 %vm138_vm0, %v864_v37  ;;  %v28_v37 = vld [vmem:[%s1365_s0 + $0x80] sm:$0xff] }
  0x76   :  { %416 = vmatmul.f32.gmra.mxu3 %v30_v48 }
  0x77   :  { %472 = vmatmul.f32.gmra.mxu2 %v22_v14 }
  0x79   :  { %277 = vmatmul.f32.gmra.mxu1 %v22_v14 }
  0x7a   :  { %646 = vmatmul.msk.f32.gmra.mxu0 %vm138_vm0, %v925_v51  ;;  %v31_v51 = vld [vmem:[%s1365_s0 + $0x98] sm:$0xff] }
  0x7e   :  { %419 = vmatmul.f32.gmra.mxu3 %v33_v53 }
  0x7f   :  { %475 = vmatmul.f32.gmra.mxu2 %v25_v25 }
  0x81   :  { %280 = vmatmul.f32.gmra.mxu1 %v25_v25 }
  0x82   :  { %647 = vmatmul.msk.f32.gmra.mxu0 %vm138_vm0, %v990_v3 }
  0x86   :  { %422 = vmatmul.f32.gmra.mxu3 %v877_v40  ;;  %v34_v40 = vld [vmem:[%s1365_s0 + $0xb0] sm:$0xff] }
  0x87   :  { %478 = vmatmul.f32.gmra.mxu2 %v28_v37 }
  0x89   :  { %283 = vmatmul.f32.gmra.mxu1 %v28_v37 }
  0x8a   :  { %648 = vmatmul.msk.f32.gmra.mxu0 %vm138_vm0, %v1053_v21 }
  0x8e   :  { %425 = vmatmul.f32.gmra.mxu3 %v940_v55  ;;  %v37_v55 = vld [vmem:[%s1365_s0 + $0xc8] sm:$0xff] }
  0x8f   :  { %481 = vmatmul.f32.gmra.mxu2 %v31_v51 }
  0x91   :  { %286 = vmatmul.f32.gmra.mxu1 %v31_v51 }
  0x92   :  { %v1213_v58 = vpop.f32.mrf.mxu2  ;;  %649 = vmatmul.msk.f32.gmra.mxu0 %vm138_vm0, %v1104_v36 }
  0x96   :  { %428 = vmatmul.f32.gmra.mxu3 %v1005_v7  ;;  %v1221_v59 = vpop.f32.mrf.mxu3  ;;  %v43_v7 = vld [vmem:[%s1365_s0 + $0xf8] sm:$0xff] }
  0x97   :  { %484 = vmatmul.f32.gmra.mxu2 %v34_v40 }
  0x99   :  { %289 = vmatmul.f32.gmra.mxu1 %v34_v40 }
  0x9a   :  { %v1223_v60 = vpop.f32.mrf.mxu2  ;;  %650 = vmatmul.msk.f32.gmra.mxu0 %vm138_vm0, %v1130_v44 }
  0x9e   :  { %v1230_v61 = vpop.f32.mrf.mxu1  ;;  %431 = vmatmul.f32.gmra.mxu3 %v1067_v26 }
  0x9f   :  { %487 = vmatmul.f32.gmra.mxu2 %v37_v55  ;;  %v1233_v62 = vpop.f32.mrf.mxu0 }
  0xa0   :  { %v1235_v63 = vpop.f32.mrf.mxu3 }
  0xa1   :  { %292 = vmatmul.f32.gmra.mxu1 %v37_v55 }
  0xa2   :  { %v1237_v0 = vpop.f32.mrf.mxu2  ;;  %651 = vmatmul.msk.f32.gmra.mxu0 %vm138_vm0, %v1147_v47 }
  0xa6   :  { %v1244_v3 = vpop.f32.mrf.mxu1  ;;  %434 = vmatmul.f32.gmra.mxu3 %v1110_v38 }
  0xa7   :  { %490 = vmatmul.f32.gmra.mxu2 %v40_v1  ;;  %v1247_v4 = vpop.f32.mrf.mxu0 }
  0xa9   :  { %295 = vmatmul.f32.gmra.mxu1 %v40_v1  ;;  %v1249_v5 = vpop.f32.mrf.mxu3 }
  0xaa   :  { %v1251_v6 = vpop.f32.mrf.mxu2  ;;  %652 = vmatmul.msk.f32.gmra.mxu0 %vm138_vm0, %v1164_v49 }
  0xae   :  { %v1258_v8 = vpop.f32.mrf.mxu1  ;;  %437 = vmatmul.f32.gmra.mxu3 %v1135_v45 }
  0xaf   :  { %493 = vmatmul.f32.gmra.mxu2 %v43_v7  ;;  %v1261_v9 = vpop.f32.mrf.mxu0 }
  0xb1   :  { %298 = vmatmul.f32.gmra.mxu1 %v43_v7  ;;  %v1263_v10 = vpop.f32.mrf.mxu3 }
  0xb2   :  { %v1265_v11 = vpop.f32.mrf.mxu2  ;;  %653 = vmatmul.msk.f32.gmra.mxu0 %vm138_vm0, %v800_v19  ;;  %v49_v19 = vld [vmem:[%s1365_s0 + $0x128] sm:$0xff] }
  0xb6   :  { %v1272_v13 = vpop.f32.mrf.mxu1  ;;  %440 = vmatmul.f32.gmra.mxu3 %v1152_v42 }
  0xb7   :  { %496 = vmatmul.f32.gmra.mxu2 %v46_v12  ;;  %v1275_v15 = vpop.f32.mrf.mxu0 }
  0xb9   :  { %301 = vmatmul.f32.gmra.mxu1 %v46_v12  ;;  %v1277_v16 = vpop.f32.mrf.mxu3 }
  0xba   :  { %v1279_v17 = vpop.f32.mrf.mxu2  ;;  %654 = vmatmul.msk.f32.gmra.mxu0 %vm138_vm0, %v853_v34  ;;  %v52_v34 = vld [vmem:[%s1365_s0 + $0x140] sm:$0xff] }
  0xbe   :  { %v1286_v20 = vpop.f32.mrf.mxu1  ;;  %443 = vmatmul.f32.gmra.mxu3 %v1169_v52 }
  0xbf   :  { %499 = vmatmul.f32.gmra.mxu2 %v49_v19  ;;  %v1289_v21 = vpop.f32.mrf.mxu0 }
  0xc1   :  { %304 = vmatmul.f32.gmra.mxu1 %v49_v19  ;;  %v1291_v22 = vpop.f32.mrf.mxu3 }
  0xc2   :  { %v1293_v23 = vpop.f32.mrf.mxu2  ;;  %655 = vmatmul.msk.f32.gmra.mxu0 %vm138_vm0, %v920_v50  ;;  %v55_v50 = vld [vmem:[%s1365_s0 + $0x158] sm:$0xff] }
  0xc6   :  { %v1300_v24 = vpop.f32.mrf.mxu1  ;;  %658 = vmatmul.msk.f32.vlgmr.msra.gmra.mxu3 %vm138_vm0, %v1095_v33 }
  0xc7   :  { %502 = vmatmul.f32.gmra.mxu2 %v52_v34  ;;  %v1304_v26 = vpop.f32.mrf.mxu0 }
  0xc9   :  { %307 = vmatmul.f32.gmra.mxu1 %v52_v34  ;;  %v399_v27 = vpop.f32.mrf.mxu3 }
  0xca   :  { %v1306_v28 = vpop.f32.mrf.mxu2  ;;  %656 = vmatmul.msk.f32.gmra.mxu0 %vm138_vm0, %v985_v2  ;;  %v58_v2 = vld [vmem:[%s1365_s0 + $0x170] sm:$0xff]  ;;  %s718_s0 = smov [#allocation2]  }
  0xcb   :  { %s613_s7 = sshll.u32 %s718_s0, 4  ;;  %s614_s7 = int_to_ptr.vmem [resolvable:$true] %s613_s7 }
  0xce   :  { %v1313_v29 = vpop.f32.mrf.mxu1 }
  0xcf   :  { %505 = vmatmul.f32.gmra.mxu2 %v55_v50  ;;  %v1315_v30 = vpop.f32.mrf.mxu0 }
  0xd1   :  { %310 = vmatmul.f32.gmra.mxu1 %v55_v50  ;;  %v402_v31 = vpop.f32.mrf.mxu3 }
  0xd2   :  { %v1317_v32 = vpop.f32.mrf.mxu2  ;;  %657 = vmatmul.msk.f32.gmra.mxu0 %vm138_vm0, %v1045_v18 }
  0xd6   :  { %v1324_v33 = vpop.f32.mrf.mxu1 }
  0xd7   :  { %508 = vmatmul.f32.gmra.mxu2 %v58_v2  ;;  %v1326_v35 = vpop.f32.mrf.mxu0 }
  0xd9   :  { %313 = vmatmul.f32.gmra.mxu1 %v58_v2  ;;  %v405_v36 = vpop.f32.mrf.mxu3 }
  0xda   :  { %v1328_v38 = vpop.f32.mrf.mxu2 }
  0xde   :  { %v269_v39 = vpop.f32.mrf.mxu1 }
  0xdf   :  { %v529_v41 = vpop.f32.mrf.mxu0  ;;  %v270_v43 = vadd.f32 %v269_v39, %v1233_v62 }
  0xe1   :  { %v408_v44 = vpop.f32.mrf.mxu3  ;;  %v335_v46 = vadd.f32 %v1213_v58, %v270_v43 }
  0xe2   :  { %v464_v45 = vpop.f32.mrf.mxu2 }
  0xe3   :  { %v465_v18 = vadd.f32 %v464_v45, %v399_v27 }
  0xe5   :  { %v530_v47 = vadd.f32 %v529_v41, %v465_v18 }
  0xe6   :  { %v272_v42 = vpop.f32.mrf.mxu1 }
  0xe7   :  { %v577_v48 = vpack.c.bf16 %v530_v47, %v335_v46  ;;  %v532_v49 = vpop.f32.mrf.mxu0  ;;  %v273_v52 = vadd.f32 %v272_v42, %v1247_v4 }
  0xe9   :  { %593 = vst [vmem:[#allocation2] sm:$0xff] %v577_v48  ;;  %v411_v53 = vpop.f32.mrf.mxu3  ;;  %v338_v57 = vadd.f32 %v1223_v60, %v273_v52 }
  0xea   :  { %v467_v54 = vpop.f32.mrf.mxu2 }
  0xeb   :  { %v468_v56 = vadd.f32 %v467_v54, %v402_v31 }
  0xed   :  { %v533_v14 = vadd.f32 %v532_v49, %v468_v56 }
  0xee   :  { %v275_v25 = vpop.f32.mrf.mxu1 }
  0xef   :  { %v578_v37 = vpack.c.bf16 %v533_v14, %v338_v57  ;;  %v535_v51 = vpop.f32.mrf.mxu0  ;;  %v276_v40 = vadd.f32 %v275_v25, %v1261_v9 }
  0xf1   :  { %594 = vst [vmem:[#allocation2 + $0x8] sm:$0xff] %v578_v37  ;;  %v414_v58 = vpop.f32.mrf.mxu3  ;;  %v341_v1 = vadd.f32 %v1237_v0, %v276_v40 }
  0xf2   :  { %v470_v55 = vpop.f32.mrf.mxu2 }
  0xf3   :  { %v471_v62 = vadd.f32 %v470_v55, %v405_v36 }
  0xf5   :  { %v536_v7 = vadd.f32 %v535_v51, %v471_v62 }
  0xf6   :  { %v278_v12 = vpop.f32.mrf.mxu1 }
  0xf7   :  { %v579_v4 = vpack.c.bf16 %v536_v7, %v341_v1  ;;  %v538_v19 = vpop.f32.mrf.mxu0  ;;  %v279_v34 = vadd.f32 %v278_v12, %v1275_v15 }
  0xf9   :  { %595 = vst [vmem:[#allocation2 + $0x10] sm:$0xff] %v579_v4  ;;  %v417_v60 = vpop.f32.mrf.mxu3  ;;  %v344_v31 = vadd.f32 %v1251_v6, %v279_v34 }
  0xfa   :  { %v473_v27 = vpop.f32.mrf.mxu2 }
  0xfb   :  { %v474_v50 = vadd.f32 %v473_v27, %v408_v44 }
  0xfd   :  { %v539_v2 = vadd.f32 %v538_v19, %v474_v50 }
  0xfe   :  { %v281_v39 = vpop.f32.mrf.mxu1 }
  0xff   :  { %v580_v9 = vpack.c.bf16 %v539_v2, %v344_v31  ;;  %v541_v41 = vpop.f32.mrf.mxu0  ;;  %v282_v36 = vadd.f32 %v281_v39, %v1289_v21 }
 0x101   :  { %596 = vst [vmem:[#allocation2 + $0x18] sm:$0xff] %v580_v9  ;;  %v420_v0 = vpop.f32.mrf.mxu3  ;;  %v347_v18 = vadd.f32 %v1265_v11, %v282_v36 }
 0x102   :  { %v476_v43 = vpop.f32.mrf.mxu2 }
 0x103   :  { %v477_v45 = vadd.f32 %v476_v43, %v411_v53 }
 0x105   :  { %v542_v46 = vadd.f32 %v541_v41, %v477_v45 }
 0x106   :  { %v284_v47 = vpop.f32.mrf.mxu1 }
 0x107   :  { %v581_v15 = vpack.c.bf16 %v542_v46, %v347_v18  ;;  %v544_v42 = vpop.f32.mrf.mxu0  ;;  %v285_v44 = vadd.f32 %v284_v47, %v1304_v26 }
 0x109   :  { %597 = vst [vmem:[#allocation2 + $0x20] sm:$0xff] %v581_v15  ;;  %v423_v48 = vpop.f32.mrf.mxu3  ;;  %v350_v52 = vadd.f32 %v1279_v17, %v285_v44 }
 0x10a   :  { %v479_v6 = vpop.f32.mrf.mxu2 }
 0x10b   :  { %v480_v49 = vadd.f32 %v479_v6, %v414_v58 }
 0x10d   :  { %v545_v54 = vadd.f32 %v544_v42, %v480_v49 }
 0x10e   :  { %v287_v56 = vpop.f32.mrf.mxu1 }
 0x10f   :  { %v582_v21 = vpack.c.bf16 %v545_v54, %v350_v52  ;;  %v547_v57 = vpop.f32.mrf.mxu0  ;;  %v288_v53 = vadd.f32 %v287_v56, %v1315_v30 }
 0x111   :  { %598 = vst [vmem:[#allocation2 + $0x28] sm:$0xff] %v582_v21  ;;  %v426_v25 = vpop.f32.mrf.mxu3  ;;  %v353_v37 = vadd.f32 %v1293_v23, %v288_v53 }
 0x112   :  { %v482_v11 = vpop.f32.mrf.mxu2 }
 0x113   :  { %v483_v14 = vadd.f32 %v482_v11, %v417_v60 }
 0x115   :  { %v548_v51 = vadd.f32 %v547_v57, %v483_v14 }
 0x116   :  { %v290_v40 = vpop.f32.mrf.mxu1 }
 0x117   :  { %v583_v26 = vpack.c.bf16 %v548_v51, %v353_v37  ;;  %v550_v55 = vpop.f32.mrf.mxu0  ;;  %v291_v58 = vadd.f32 %v290_v40, %v1326_v35 }
 0x119   :  { %599 = vst [vmem:[#allocation2 + $0x30] sm:$0xff] %v583_v26  ;;  %v356_v1 = vadd.f32 %v1306_v28, %v291_v58  ;;  %v429_v4 = vpop.f32.mrf.mxu3 }
 0x11a   :  { %v485_v17 = vpop.f32.mrf.mxu2 }
 0x11b   :  { %v486_v62 = vadd.f32 %v485_v17, %v420_v0 }
 0x11d   :  { %v551_v7 = vadd.f32 %v550_v55, %v486_v62 }
 0x11e   :  { %v293_v12 = vpop.f32.mrf.mxu1 }
 0x11f   :  { %v584_v30 = vpack.c.bf16 %v551_v7, %v356_v1  ;;  %v553_v19 = vpop.f32.mrf.mxu0  ;;  %v294_v34 = vadd.f32 %v293_v12, %v1230_v61 }
 0x121   :  { %600 = vst [vmem:[#allocation2 + $0x38] sm:$0xff] %v584_v30  ;;  %v359_v27 = vadd.f32 %v1317_v32, %v294_v34  ;;  %v432_v39 = vpop.f32.mrf.mxu3 }
 0x122   :  { %v488_v23 = vpop.f32.mrf.mxu2 }
 0x123   :  { %v489_v60 = vadd.f32 %v488_v23, %v423_v48 }
 0x125   :  { %v554_v50 = vadd.f32 %v553_v19, %v489_v60 }
 0x126   :  { %v296_v31 = vpop.f32.mrf.mxu1 }
 0x127   :  { %v585_v2 = vpack.c.bf16 %v554_v50, %v359_v27  ;;  %v556_v35 = vpop.f32.mrf.mxu0  ;;  %v297_v28 = vadd.f32 %v296_v31, %v1244_v3 }
 0x129   :  { %601 = vst [vmem:[#allocation2 + $0x40] sm:$0xff] %v585_v2  ;;  %v362_v36 = vadd.f32 %v1328_v38, %v297_v28  ;;  %v435_v46 = vpop.f32.mrf.mxu3 }
 0x12a   :  { %v491_v9 = vpop.f32.mrf.mxu2 }
 0x12b   :  { %v492_v41 = vadd.f32 %v491_v9, %v426_v25 }
 0x12d   :  { %v557_v0 = vadd.f32 %v556_v35, %v492_v41 }
 0x12e   :  { %v299_v43 = vpop.f32.mrf.mxu1 }
 0x12f   :  { %v586_v45 = vpack.c.bf16 %v557_v0, %v362_v36  ;;  %v559_v61 = vpop.f32.mrf.mxu0  ;;  %v300_v18 = vadd.f32 %v299_v43, %v1258_v8 }
 0x131   :  { %602 = vst [vmem:[#allocation2 + $0x48] sm:$0xff] %v586_v45  ;;  %v365_v15 = vadd.f32 %v1221_v59, %v300_v18  ;;  %v438_v52 = vpop.f32.mrf.mxu3 }
 0x132   :  { %v494_v32 = vpop.f32.mrf.mxu2 }
 0x133   :  { %v495_v47 = vadd.f32 %v494_v32, %v429_v4 }
 0x135   :  { %v560_v42 = vadd.f32 %v559_v61, %v495_v47 }
 0x136   :  { %v302_v44 = vpop.f32.mrf.mxu1 }
 0x137   :  { %v587_v6 = vpack.c.bf16 %v560_v42, %v365_v15  ;;  %v562_v3 = vpop.f32.mrf.mxu0  ;;  %v303_v48 = vadd.f32 %v302_v44, %v1272_v13 }
 0x139   :  { %603 = vst [vmem:[#allocation2 + $0x50] sm:$0xff] %v587_v6  ;;  %v368_v54 = vadd.f32 %v1235_v63, %v303_v48  ;;  %v441_v51 = vpop.f32.mrf.mxu3 }
 0x13a   :  { %v497_v38 = vpop.f32.mrf.mxu2 }
 0x13b   :  { %v498_v49 = vadd.f32 %v497_v38, %v432_v39 }
 0x13d   :  { %v563_v56 = vadd.f32 %v562_v3, %v498_v49 }
 0x13e   :  { %v305_v21 = vpop.f32.mrf.mxu1 }
 0x13f   :  { %v588_v8 = vpack.c.bf16 %v563_v56, %v368_v54  ;;  %v565_v57 = vpop.f32.mrf.mxu0  ;;  %v306_v53 = vadd.f32 %v305_v21, %v1286_v20 }
 0x141   :  { %604 = vst [vmem:[#allocation2 + $0x58] sm:$0xff] %v588_v8  ;;  %v371_v14 = vadd.f32 %v1249_v5, %v306_v53  ;;  %v444_v20 = vpop.f32.mrf.mxu3 }
 0x142   :  { %v500_v59 = vpop.f32.mrf.mxu2 }
 0x143   :  { %v501_v11 = vadd.f32 %v500_v59, %v435_v46 }
 0x145   :  { %v566_v25 = vadd.f32 %v565_v57, %v501_v11 }
 0x146   :  { %v308_v37 = vpop.f32.mrf.mxu1 }
 0x147   :  { %v589_v13 = vpack.c.bf16 %v566_v25, %v371_v14  ;;  %v568_v40 = vpop.f32.mrf.mxu0  ;;  %v309_v26 = vadd.f32 %v308_v37, %v1300_v24 }
 0x149   :  { %605 = vst [vmem:[#allocation2 + $0x60] sm:$0xff] %v589_v13  ;;  %v374_v58 = vadd.f32 %v1263_v10, %v309_v26  ;;  %v574_v10 = vpop.f32.mrf.mxu3 }
 0x14a   :  { %v503_v63 = vpop.f32.mrf.mxu2 }
 0x14b   :  { %v504_v55 = vadd.f32 %v503_v63, %v438_v52 }
 0x14d   :  { %v569_v17 = vadd.f32 %v568_v40, %v504_v55 }
 0x14e   :  { %v311_v62 = vpop.f32.mrf.mxu1 }
 0x14f   :  { %v590_v1 = vpack.c.bf16 %v569_v17, %v374_v58  ;;  %v312_v7 = vadd.f32 %v311_v62, %v1313_v29  ;;  %v571_v12 = vpop.f32.mrf.mxu0 }
 0x151   :  { %606 = vst [vmem:[#allocation2 + $0x68] sm:$0xff] %v590_v1  ;;  %v377_v30 = vadd.f32 %v1277_v16, %v312_v7 }
 0x152   :  { %v506_v5 = vpop.f32.mrf.mxu2 }
 0x153   :  { %v507_v4 = vadd.f32 %v506_v5, %v441_v51 }
 0x155   :  { %v572_v19 = vadd.f32 %v571_v12, %v507_v4 }
 0x156   :  { %v314_v34 = vpop.f32.mrf.mxu1 }
 0x157   :  { %v591_v23 = vpack.c.bf16 %v572_v19, %v377_v30  ;;  %v315_v24 = vadd.f32 %v314_v34, %v1324_v33 }
 0x159   :  { %607 = vst [vmem:[#allocation2 + $0x70] sm:$0xff] %v591_v23  ;;  %v380_v29 = vadd.f32 %v1291_v22, %v315_v24 }
 0x15a   :  { %v509_v60 = vpop.f32.mrf.mxu2 }
 0x15b   :  { %v510_v27 = vadd.f32 %v509_v60, %v444_v20 }
 0x15d   :  { %v575_v50 = vadd.f32 %v574_v10, %v510_v27 }
 0x15f   :  { %v592_v16 = vpack.c.bf16 %v575_v50, %v380_v29 }
 0x161   :  { %608 = vst [vmem:[#allocation2 + $0x78] sm:$0xff] %v592_v16 }
 0x162   :  { %621 = dma.vmem_to_hbm [thread:$0]  %s614_s7, 2048, %s616_s10, [#allocation3], %s719_s11, %s719_s11, %s720_s12  }
 0x163   :  { %716 = dma.done.wait [#allocation3], 2048  }
 0x164   :  { %717 = vsyncadd [#allocation3], 4294965248 }
 0x165   :  { %626 = vsyncpa [#allocation3], 1 }

</bundles_post_ra>
